<compile_context>
chip_gen: v7x
topology: tpu7x:2x2x1
jax: 0.10.0
libtpu: 0.0.40
codegen_flags: <defaults>
</compile_context>

<pallas_src>
import jax
import jax.numpy as jnp
from jax import lax
from jax.experimental import pallas as pl
from jax.experimental.pallas import tpu as pltpu

_LANES = 128
_SUBLANES = 8


def _cdiv(a, b):
    return (a + b - 1) // b


def _make_kernel(C, R, T, S, masked, clamp_pred, A):
    """Kernel for C classes, R spatial rows (of 128 px) per tile, A accumulator rows."""

    def fold(a):
        # (R, 128) -> (A, 128).  A == 8: pure element-wise vreg adds (no XLU);
        # A == 1 only for tiny single-tile inputs whose row count is not a multiple of 8.
        if A == _SUBLANES:
            return jnp.sum(a.reshape(R // _SUBLANES, _SUBLANES, _LANES), axis=0)
        return jnp.sum(a, axis=0, keepdims=True)

    def kernel(pred_ref, tgt_ref, inter_ref, psum_ref, ce_ref):
        t_id = pl.program_id(2)

        # Per-(batch, core) accumulators: output block index is constant along the
        # innermost ("arbitrary") tile axis, so they stay resident in VMEM and are
        # written back to HBM once per (batch, core).
        @pl.when(t_id == 0)
        def _():
            inter_ref[...] = jnp.zeros_like(inter_ref)
            psum_ref[...] = jnp.zeros_like(psum_ref)
            ce_ref[...] = jnp.zeros_like(ce_ref)

        tgt = tgt_ref[0].astype(jnp.int32)              # (R, 128); -1 marks padding

        if masked:
            # Global pixel index from the LOGICAL tile id (core * T + t); dummy tiles
            # created by the core split map past S and are therefore fully masked.
            tile = pl.program_id(1) * T + t_id
            row = lax.broadcasted_iota(jnp.int32, (R, _LANES), 0) + tile * R
            lane = lax.broadcasted_iota(jnp.int32, (R, _LANES), 1)
            valid = (row * _LANES + lane) < S
        else:
            valid = None

        # Load the C class slabs once (native dtype -> f32 cast in-kernel).  All
        # class-axis math is unrolled over slabs: pure VPU/EUP work on full vregs.
        # TODO(synk): for very large C (> ~64) this unrolled form should become a
        # class-chunked fori_loop to bound code size / VMEM temporaries.
        xs = []
        for c in range(C):
            x = pred_ref[0, c].astype(jnp.float32)
            if clamp_pred:
                # Ragged tail tile reads undefined HBM data: clamp BEFORE exp so no
                # inf/NaN can leak through the masking (select, not multiply-by-0).
                x = jnp.where(valid, x, 0.0)
            xs.append(x)

        m = xs[0]
        for c in range(1, C):
            m = jnp.maximum(m, xs[c])                   # class-axis max (VPU)
        es = [jnp.exp(xs[c] - m) for c in range(C)]     # EUP
        z = es[0]
        for c in range(1, C):
            z = z + es[c]                               # class-axis sum (VPU)

        # One reciprocal per pixel, then C multiplies.  approx=True would move the
        # Newton refinement off the (binding) VALU slot if the tolerance allows.
        inv_z = pl.reciprocal(z, approx=False)
        lse = m + jnp.log(z)                            # (R, 128)
        if masked:
            # Zeroing inv_z zeroes every softmax prob at padded / out-of-range pixels
            # with a single select per pixel (instead of one per class).
            inv_z = jnp.where(valid, inv_z, 0.0)

        logit_t = jnp.zeros_like(m)
        for c in range(C):
            pc = es[c] * inv_z                          # softmax prob of class c
            hit = tgt == c                              # padding (-1) never hits
            inter_ref[0, 0, c] += fold(jnp.where(hit, pc, 0.0))
            psum_ref[0, 0, c] += fold(pc)
            logit_t = logit_t + jnp.where(hit, xs[c], 0.0)

        ce_pix = lse - logit_t                          # per-pixel cross entropy
        if masked:
            ce_pix = jnp.where(valid, ce_pix, 0.0)
        ce_ref[0, 0] += fold(ce_pix)

    return kernel


def combined_loss(pred, target, alpha=0.5, smooth=1e-5, max_rows_per_tile=2048):
    """pred: (N, C, H, W, D) float logits (any float dtype); target: (N, H, W, D) ints."""
    N, C, H, W, D = pred.shape
    S = H * W * D

    # ---- spatial tiling: R rows of 128 pixels per grid step -------------------------
    rows128 = _cdiv(S, _LANES)                 # rows needed to hold all pixels
    pad128 = rows128 * _LANES - S              # 0..127 pixels of reshape padding

    itemsize = jnp.dtype(pred.dtype).itemsize
    # ~3 MiB pred tile budget keeps live VMEM (double-buffered pred + f32 xs/es +
    # temporaries) under ~30 MiB on every generation, including v7x's 64 MiB/TC.
    budget_rows = ((3 << 20) // (C * _LANES * itemsize)) // 32 * 32
    r_cap = max(32, (min(2048, max_rows_per_tile, max(32, budget_rows)) // 32) * 32)

    if rows128 <= r_cap:
        R, num_tiles = rows128, 1              # single full-dim tile (always legal)
    else:
        R, num_tiles = r_cap, _cdiv(rows128, r_cap)   # tail tile may be ragged

    NC = 2 if num_tiles >= 2 else 1            # 2-way core split over spatial tiles
    T = _cdiv(num_tiles, NC)                   # tiles per core
    rows_t = NC * T * R                        # rows covered by the logical tile grid
    masked = rows_t * _LANES != S              # any padded / ragged / dummy pixels?
    clamp_pred = rows128 % R != 0              # pred tail tile reads undefined data
    A = _SUBLANES if R % _SUBLANES == 0 else 1

    # ---- reshape inputs (pred stays in native dtype; no whole-tensor pad) -----------
    tgt_dtype = jnp.int8 if C <= 127 else jnp.int32    # int8 cuts target HBM traffic 4x
    pred3 = pred.reshape(N, C, S)
    if pad128:
        # TODO(synk): only when H*W*D % 128 != 0 -- costs one extra copy of pred,
        # needed to make the (rows, 128) reshape legal.
        pred3 = jnp.pad(pred3, ((0, 0), (0, 0), (0, pad128)))
    pred4 = pred3.reshape(N, C, rows128, _LANES)

    tgt2 = target.reshape(N, S).astype(tgt_dtype)
    pad_t = rows_t * _LANES - S
    if pad_t:
        # Target is tiny (1 byte/pixel): pad it to cover every logical tile so the
        # kernel never sees garbage labels (sentinel -1 never matches a class).
        tgt2 = jnp.pad(tgt2, ((0, 0), (0, pad_t)), constant_values=-1)
    tgt3 = tgt2.reshape(N, rows_t, _LANES)

    last_tile = num_tiles - 1
    kernel = _make_kernel(C, R, T, S, masked, clamp_pred, A)

    inter, psum, ce = pl.pallas_call(
        kernel,
        grid_spec=pltpu.PrefetchScalarGridSpec(
            num_scalar_prefetch=0,
            grid=(N, NC, T),
            in_specs=[
                # pred: clamp dummy tiles (from the core split) onto the last real
                # tile; their contributions are zeroed by the in-kernel mask.
                # (On v5e, pipeline_mode=pl.Buffered(3) here can hide exposed DMA.)
                pl.BlockSpec(
                    (1, C, R, _LANES),
                    lambda n, c, t: (n, 0, jnp.minimum(c * T + t, last_tile), 0),
                ),
                # target is padded to cover all logical tiles -> never ragged.
                pl.BlockSpec((1, R, _LANES), lambda n, c, t: (n, c * T + t, 0)),
            ],
            out_specs=[
                pl.BlockSpec((1, 1, C, A, _LANES), lambda n, c, t: (n, c, 0, 0, 0)),
                pl.BlockSpec((1, 1, C, A, _LANES), lambda n, c, t: (n, c, 0, 0, 0)),
                pl.BlockSpec((1, 1, A, _LANES), lambda n, c, t: (n, c, 0, 0)),
            ],
        ),
        out_shape=(
            jax.ShapeDtypeStruct((N, NC, C, A, _LANES), jnp.float32),
            jax.ShapeDtypeStruct((N, NC, C, A, _LANES), jnp.float32),
            jax.ShapeDtypeStruct((N, NC, A, _LANES), jnp.float32),
        ),
        compiler_params=pltpu.CompilerParams(
            dimension_semantics=("parallel", "parallel", "arbitrary"),
            vmem_limit_bytes=48 * 1024 * 1024,
        ),
    )(pred4, tgt3)

    # ---- tiny JAX epilogue -----------------------------------------------------------
    inter = inter.sum(axis=(1, 3, 4))                   # (N, C) intersection
    psum = psum.sum(axis=(1, 3, 4))                     # (N, C) sum of softmax probs
    ce_loss = ce.sum() / jnp.float32(N * S)

    # Per-class target pixel counts from the small target tensor (fused compare+reduce).
    tflat = target.reshape(N, S)
    classes = jnp.arange(C, dtype=tflat.dtype)
    tsum = jnp.sum(
        (tflat[:, None, :] == classes[None, :, None]).astype(jnp.float32), axis=-1
    )

    dice = (2.0 * inter + smooth) / (psum + tsum + smooth)
    dice_l = 1.0 - jnp.mean(dice)
    return alpha * dice_l + (1.0 - alpha) * ce_loss


def _reference_loss(pred, target, alpha=0.5, smooth=1e-5):
    """Pure-JAX reference mirroring the PyTorch CombinedLoss semantics."""
    p = jax.nn.softmax(pred, axis=1)
    oh = jax.nn.one_hot(target, pred.shape[1], axis=1, dtype=jnp.float32)
    inter = jnp.sum(p * oh, axis=(2, 3, 4))
    union = jnp.sum(p, axis=(2, 3, 4)) + jnp.sum(oh, axis=(2, 3, 4))
    dice = (2.0 * inter + smooth) / (union + smooth)
    dice_l = 1.0 - jnp.mean(dice)
    logp = jax.nn.log_softmax(pred, axis=1)
    ce = -jnp.mean(jnp.sum(oh * logp, axis=1))
    return alpha * dice_l + (1.0 - alpha) * ce


if __name__ == "__main__":
    key = jax.random.PRNGKey(0)
    ks = jax.random.split(key, 6)

    # Case 1: aligned spatial size (no padding / masking; single tile; A=8 fold).
    N, C, H, W, D = 2, 4, 16, 16, 16
    pred = jax.random.normal(ks[0], (N, C, H, W, D), dtype=jnp.float32)
    target = jax.random.randint(ks[1], (N, H, W, D), 0, C, dtype=jnp.int32)
    out = jax.block_until_ready(combined_loss(pred, target, alpha=0.5))
    ref = _reference_loss(pred, target, alpha=0.5)
    assert jnp.allclose(out, ref, atol=1e-5, rtol=1e-5), (out, ref)

    # Case 2: ragged spatial size (S % 128 != 0) -> pixel mask + small-tile fold path.
    N2, C2, H2, W2, D2 = 1, 3, 7, 9, 5
    pred2 = jax.random.normal(ks[2], (N2, C2, H2, W2, D2), dtype=jnp.float32)
    target2 = jax.random.randint(ks[3], (N2, H2, W2, D2), 0, C2, dtype=jnp.int32)
    out2 = jax.block_until_ready(combined_loss(pred2, target2, alpha=0.5))
    ref2 = _reference_loss(pred2, target2, alpha=0.5)
    assert jnp.allclose(out2, ref2, atol=1e-5, rtol=1e-5), (out2, ref2)

    # Case 3: multi-tile path with 2-way core split, ragged tail tile and a dummy
    # tile (odd tile count), without any pred padding (S is a multiple of 128).
    N3, C3, H3, W3, D3 = 2, 5, 16, 16, 35               # S = 8960 = 70 rows of 128
    pred3 = jax.random.normal(ks[4], (N3, C3, H3, W3, D3), dtype=jnp.float32)
    target3 = jax.random.randint(ks[5], (N3, H3, W3, D3), 0, C3, dtype=jnp.int32)
    out3 = jax.block_until_ready(
        combined_loss(pred3, target3, alpha=0.5, max_rows_per_tile=32)
    )
    ref3 = _reference_loss(pred3, target3, alpha=0.5)
    assert jnp.allclose(out3, ref3, atol=1e-5, rtol=1e-5), (out3, ref3)

    # Case 4: bf16 logits DMA'd in native dtype (upcast to f32 inside the kernel).
    pred_bf16 = pred.astype(jnp.bfloat16)
    out4 = jax.block_until_ready(combined_loss(pred_bf16, target, alpha=0.5))
    ref4 = _reference_loss(pred_bf16.astype(jnp.float32), target, alpha=0.5)
    assert jnp.allclose(out4, ref4, atol=1e-5, rtol=1e-5), (out4, ref4)

    print("KERNEL_OK")
</pallas_src>

<mosaic_0001>
module attributes {stable_mosaic.version = 11 : i64} {
  func.func @kernel(%arg0: i32, %arg1: i32, %arg2: i32, %arg3: memref<1x4x32x128xf32, #tpu.memory_space<vmem>>, %arg4: memref<1x32x128xi8, #tpu.memory_space<vmem>>, %arg5: memref<1x1x4x8x128xf32, #tpu.memory_space<vmem>>, %arg6: memref<1x1x4x8x128xf32, #tpu.memory_space<vmem>>, %arg7: memref<1x1x8x128xf32, #tpu.memory_space<vmem>>) attributes {dimension_semantics = [#tpu.dimension_semantics<parallel>, #tpu.dimension_semantics<parallel>, #tpu.dimension_semantics<arbitrary>], iteration_bounds = array<i64: 2, 1, 1>, scalar_prefetch = 0 : i64, scratch_operands = 0 : i64, tpu.core_type = #tpu.core_type<tc>, window_params = [{transform_indices = @transform_0, window_bounds = array<i64: 1, 4, 32, 128>}, {transform_indices = @transform_1, window_bounds = array<i64: 1, 32, 128>}, {transform_indices = @transform_2, window_bounds = array<i64: 1, 1, 4, 8, 128>}, {transform_indices = @transform_3, window_bounds = array<i64: 1, 1, 4, 8, 128>}, {transform_indices = @transform_4, window_bounds = array<i64: 1, 1, 8, 128>}]} {
    %c0_i32 = arith.constant 0 : i32
    %0 = arith.cmpi eq, %arg2, %c0_i32 : i32
    %1 = arith.extui %0 : i1 to i32
    %c0_i32_0 = arith.constant 0 : i32
    %2 = arith.cmpi ne, %1, %c0_i32_0 : i32
    scf.if %2 {
      %cst_122 = arith.constant 0.000000e+00 : f32
      %137 = vector.broadcast %cst_122 : f32 to vector<1x1x4x8x128xf32>
      %c0_123 = arith.constant 0 : index
      %c0_124 = arith.constant 0 : index
      %c0_125 = arith.constant 0 : index
      %c0_126 = arith.constant 0 : index
      %c0_127 = arith.constant 0 : index
      %138 = vector.load %arg5[%c0_123, %c0_124, %c0_125, %c0_126, %c0_127] : memref<1x1x4x8x128xf32, #tpu.memory_space<vmem>>, vector<1x1x4x8x128xf32>
      tpu.vector_store %arg5[%c0_123, %c0_124, %c0_125, %c0_126, %c0_127], %137 {strides = array<i32>} : memref<1x1x4x8x128xf32, #tpu.memory_space<vmem>>, vector<1x1x4x8x128xf32>,
      %cst_128 = arith.constant 0.000000e+00 : f32
      %139 = vector.broadcast %cst_128 : f32 to vector<1x1x4x8x128xf32>
      %c0_129 = arith.constant 0 : index
      %c0_130 = arith.constant 0 : index
      %c0_131 = arith.constant 0 : index
      %c0_132 = arith.constant 0 : index
      %c0_133 = arith.constant 0 : index
      %140 = vector.load %arg6[%c0_129, %c0_130, %c0_131, %c0_132, %c0_133] : memref<1x1x4x8x128xf32, #tpu.memory_space<vmem>>, vector<1x1x4x8x128xf32>
      tpu.vector_store %arg6[%c0_129, %c0_130, %c0_131, %c0_132, %c0_133], %139 {strides = array<i32>} : memref<1x1x4x8x128xf32, #tpu.memory_space<vmem>>, vector<1x1x4x8x128xf32>,
      %cst_134 = arith.constant 0.000000e+00 : f32
      %141 = vector.broadcast %cst_134 : f32 to vector<1x1x8x128xf32>
      %c0_135 = arith.constant 0 : index
      %c0_136 = arith.constant 0 : index
      %c0_137 = arith.constant 0 : index
      %c0_138 = arith.constant 0 : index
      %142 = vector.load %arg7[%c0_135, %c0_136, %c0_137, %c0_138] : memref<1x1x8x128xf32, #tpu.memory_space<vmem>>, vector<1x1x8x128xf32>
      tpu.vector_store %arg7[%c0_135, %c0_136, %c0_137, %c0_138], %141 {strides = array<i32>} : memref<1x1x8x128xf32, #tpu.memory_space<vmem>>, vector<1x1x8x128xf32>,
    } else {
    }
    %c0 = arith.constant 0 : index
    %c0_1 = arith.constant 0 : index
    %c0_2 = arith.constant 0 : index
    %3 = vector.load %arg4[%c0, %c0_1, %c0_2] : memref<1x32x128xi8, #tpu.memory_space<vmem>>, vector<1x32x128xi8>
    %4 = vector.shape_cast %3 : vector<1x32x128xi8> to vector<32x128xi8>
    %5 = arith.extsi %4 : vector<32x128xi8> to vector<32x128xi32>
    %c0_3 = arith.constant 0 : index
    %c0_4 = arith.constant 0 : index
    %c0_5 = arith.constant 0 : index
    %c0_6 = arith.constant 0 : index
    %6 = vector.load %arg3[%c0_3, %c0_4, %c0_5, %c0_6] : memref<1x4x32x128xf32, #tpu.memory_space<vmem>>, vector<1x1x32x128xf32>
    %7 = vector.shape_cast %6 : vector<1x1x32x128xf32> to vector<32x128xf32>
    %c0_7 = arith.constant 0 : index
    %c1 = arith.constant 1 : index
    %c0_8 = arith.constant 0 : index
    %c0_9 = arith.constant 0 : index
    %8 = vector.load %arg3[%c0_7, %c1, %c0_8, %c0_9] : memref<1x4x32x128xf32, #tpu.memory_space<vmem>>, vector<1x1x32x128xf32>
    %9 = vector.shape_cast %8 : vector<1x1x32x128xf32> to vector<32x128xf32>
    %c0_10 = arith.constant 0 : index
    %c2 = arith.constant 2 : index
    %c0_11 = arith.constant 0 : index
    %c0_12 = arith.constant 0 : index
    %10 = vector.load %arg3[%c0_10, %c2, %c0_11, %c0_12] : memref<1x4x32x128xf32, #tpu.memory_space<vmem>>, vector<1x1x32x128xf32>
    %11 = vector.shape_cast %10 : vector<1x1x32x128xf32> to vector<32x128xf32>
    %c0_13 = arith.constant 0 : index
    %c3 = arith.constant 3 : index
    %c0_14 = arith.constant 0 : index
    %c0_15 = arith.constant 0 : index
    %12 = vector.load %arg3[%c0_13, %c3, %c0_14, %c0_15] : memref<1x4x32x128xf32, #tpu.memory_space<vmem>>, vector<1x1x32x128xf32>
    %13 = vector.shape_cast %12 : vector<1x1x32x128xf32> to vector<32x128xf32>
    %14 = arith.maximumf %7, %9 : vector<32x128xf32>
    %15 = arith.maximumf %14, %11 : vector<32x128xf32>
    %16 = arith.maximumf %15, %13 : vector<32x128xf32>
    %17 = arith.subf %7, %16 : vector<32x128xf32>
    %18 = math.exp %17 : vector<32x128xf32>
    %19 = arith.subf %9, %16 : vector<32x128xf32>
    %20 = math.exp %19 : vector<32x128xf32>
    %21 = arith.subf %11, %16 : vector<32x128xf32>
    %22 = math.exp %21 : vector<32x128xf32>
    %23 = arith.subf %13, %16 : vector<32x128xf32>
    %24 = math.exp %23 : vector<32x128xf32>
    %25 = arith.addf %18, %20 : vector<32x128xf32>
    %26 = arith.addf %25, %22 : vector<32x128xf32>
    %27 = arith.addf %26, %24 : vector<32x128xf32>
    %28 = tpu.reciprocal %27 : vector<32x128xf32> -> vector<32x128xf32>
    %29 = math.log %27 : vector<32x128xf32>
    %30 = arith.addf %16, %29 : vector<32x128xf32>
    %cst = arith.constant 0.000000e+00 : f32
    %31 = vector.broadcast %cst : f32 to vector<32x128xf32>
    %32 = arith.mulf %18, %28 : vector<32x128xf32>
    %c0_i32_16 = arith.constant 0 : i32
    %33 = vector.broadcast %c0_i32_16 : i32 to vector<32x128xi32>
    %34 = arith.cmpi eq, %5, %33 : vector<32x128xi32>
    %c0_17 = arith.constant 0 : index
    %c0_18 = arith.constant 0 : index
    %c0_19 = arith.constant 0 : index
    %c0_20 = arith.constant 0 : index
    %c0_21 = arith.constant 0 : index
    %35 = vector.load %arg5[%c0_17, %c0_18, %c0_19, %c0_20, %c0_21] : memref<1x1x4x8x128xf32, #tpu.memory_space<vmem>>, vector<1x1x1x8x128xf32>
    %36 = vector.shape_cast %35 : vector<1x1x1x8x128xf32> to vector<8x128xf32>
    %cst_22 = arith.constant 0.000000e+00 : f32
    %37 = vector.broadcast %cst_22 : f32 to vector<32x128xf32>
    %38 = arith.select %34, %32, %37 : vector<32x128xi1>, vector<32x128xf32>
    %39 = vector.shape_cast %38 : vector<32x128xf32> to vector<4x8x128xf32>
    %cst_23 = arith.constant dense<0.000000e+00> : vector<8x128xf32>
    %40 = vector.multi_reduction <add>, %39, %cst_23 [0] : vector<4x8x128xf32> to vector<8x128xf32>
    %41 = arith.addf %36, %40 : vector<8x128xf32>
    %c0_24 = arith.constant 0 : index
    %c0_25 = arith.constant 0 : index
    %c0_26 = arith.constant 0 : index
    %c0_27 = arith.constant 0 : index
    %c0_28 = arith.constant 0 : index
    %42 = vector.load %arg5[%c0_24, %c0_25, %c0_26, %c0_27, %c0_28] : memref<1x1x4x8x128xf32, #tpu.memory_space<vmem>>, vector<1x1x1x8x128xf32>
    %43 = vector.shape_cast %42 : vector<1x1x1x8x128xf32> to vector<8x128xf32>
    %44 = vector.shape_cast %41 : vector<8x128xf32> to vector<1x1x1x8x128xf32>
    tpu.vector_store %arg5[%c0_24, %c0_25, %c0_26, %c0_27, %c0_28], %44 {strides = array<i32>} : memref<1x1x4x8x128xf32, #tpu.memory_space<vmem>>, vector<1x1x1x8x128xf32>,
    %c0_29 = arith.constant 0 : index
    %c0_30 = arith.constant 0 : index
    %c0_31 = arith.constant 0 : index
    %c0_32 = arith.constant 0 : index
    %c0_33 = arith.constant 0 : index
    %45 = vector.load %arg6[%c0_29, %c0_30, %c0_31, %c0_32, %c0_33] : memref<1x1x4x8x128xf32, #tpu.memory_space<vmem>>, vector<1x1x1x8x128xf32>
    %46 = vector.shape_cast %45 : vector<1x1x1x8x128xf32> to vector<8x128xf32>
    %47 = vector.shape_cast %32 : vector<32x128xf32> to vector<4x8x128xf32>
    %cst_34 = arith.constant dense<0.000000e+00> : vector<8x128xf32>
    %48 = vector.multi_reduction <add>, %47, %cst_34 [0] : vector<4x8x128xf32> to vector<8x128xf32>
    %49 = arith.addf %46, %48 : vector<8x128xf32>
    %c0_35 = arith.constant 0 : index
    %c0_36 = arith.constant 0 : index
    %c0_37 = arith.constant 0 : index
    %c0_38 = arith.constant 0 : index
    %c0_39 = arith.constant 0 : index
    %50 = vector.load %arg6[%c0_35, %c0_36, %c0_37, %c0_38, %c0_39] : memref<1x1x4x8x128xf32, #tpu.memory_space<vmem>>, vector<1x1x1x8x128xf32>
    %51 = vector.shape_cast %50 : vector<1x1x1x8x128xf32> to vector<8x128xf32>
    %52 = vector.shape_cast %49 : vector<8x128xf32> to vector<1x1x1x8x128xf32>
    tpu.vector_store %arg6[%c0_35, %c0_36, %c0_37, %c0_38, %c0_39], %52 {strides = array<i32>} : memref<1x1x4x8x128xf32, #tpu.memory_space<vmem>>, vector<1x1x1x8x128xf32>,
    %cst_40 = arith.constant 0.000000e+00 : f32
    %53 = vector.broadcast %cst_40 : f32 to vector<32x128xf32>
    %54 = arith.select %34, %7, %53 : vector<32x128xi1>, vector<32x128xf32>
    %55 = arith.addf %31, %54 : vector<32x128xf32>
    %56 = arith.mulf %20, %28 : vector<32x128xf32>
    %c1_i32 = arith.constant 1 : i32
    %57 = vector.broadcast %c1_i32 : i32 to vector<32x128xi32>
    %58 = arith.cmpi eq, %5, %57 : vector<32x128xi32>
    %c0_41 = arith.constant 0 : index
    %c0_42 = arith.constant 0 : index
    %c1_43 = arith.constant 1 : index
    %c0_44 = arith.constant 0 : index
    %c0_45 = arith.constant 0 : index
    %59 = vector.load %arg5[%c0_41, %c0_42, %c1_43, %c0_44, %c0_45] : memref<1x1x4x8x128xf32, #tpu.memory_space<vmem>>, vector<1x1x1x8x128xf32>
    %60 = vector.shape_cast %59 : vector<1x1x1x8x128xf32> to vector<8x128xf32>
    %cst_46 = arith.constant 0.000000e+00 : f32
    %61 = vector.broadcast %cst_46 : f32 to vector<32x128xf32>
    %62 = arith.select %58, %56, %61 : vector<32x128xi1>, vector<32x128xf32>
    %63 = vector.shape_cast %62 : vector<32x128xf32> to vector<4x8x128xf32>
    %cst_47 = arith.constant dense<0.000000e+00> : vector<8x128xf32>
    %64 = vector.multi_reduction <add>, %63, %cst_47 [0] : vector<4x8x128xf32> to vector<8x128xf32>
    %65 = arith.addf %60, %64 : vector<8x128xf32>
    %c0_48 = arith.constant 0 : index
    %c0_49 = arith.constant 0 : index
    %c1_50 = arith.constant 1 : index
    %c0_51 = arith.constant 0 : index
    %c0_52 = arith.constant 0 : index
    %66 = vector.load %arg5[%c0_48, %c0_49, %c1_50, %c0_51, %c0_52] : memref<1x1x4x8x128xf32, #tpu.memory_space<vmem>>, vector<1x1x1x8x128xf32>
    %67 = vector.shape_cast %66 : vector<1x1x1x8x128xf32> to vector<8x128xf32>
    %68 = vector.shape_cast %65 : vector<8x128xf32> to vector<1x1x1x8x128xf32>
    tpu.vector_store %arg5[%c0_48, %c0_49, %c1_50, %c0_51, %c0_52], %68 {strides = array<i32>} : memref<1x1x4x8x128xf32, #tpu.memory_space<vmem>>, vector<1x1x1x8x128xf32>,
    %c0_53 = arith.constant 0 : index
    %c0_54 = arith.constant 0 : index
    %c1_55 = arith.constant 1 : index
    %c0_56 = arith.constant 0 : index
    %c0_57 = arith.constant 0 : index
    %69 = vector.load %arg6[%c0_53, %c0_54, %c1_55, %c0_56, %c0_57] : memref<1x1x4x8x128xf32, #tpu.memory_space<vmem>>, vector<1x1x1x8x128xf32>
    %70 = vector.shape_cast %69 : vector<1x1x1x8x128xf32> to vector<8x128xf32>
    %71 = vector.shape_cast %56 : vector<32x128xf32> to vector<4x8x128xf32>
    %cst_58 = arith.constant dense<0.000000e+00> : vector<8x128xf32>
    %72 = vector.multi_reduction <add>, %71, %cst_58 [0] : vector<4x8x128xf32> to vector<8x128xf32>
    %73 = arith.addf %70, %72 : vector<8x128xf32>
    %c0_59 = arith.constant 0 : index
    %c0_60 = arith.constant 0 : index
    %c1_61 = arith.constant 1 : index
    %c0_62 = arith.constant 0 : index
    %c0_63 = arith.constant 0 : index
    %74 = vector.load %arg6[%c0_59, %c0_60, %c1_61, %c0_62, %c0_63] : memref<1x1x4x8x128xf32, #tpu.memory_space<vmem>>, vector<1x1x1x8x128xf32>
    %75 = vector.shape_cast %74 : vector<1x1x1x8x128xf32> to vector<8x128xf32>
    %76 = vector.shape_cast %73 : vector<8x128xf32> to vector<1x1x1x8x128xf32>
    tpu.vector_store %arg6[%c0_59, %c0_60, %c1_61, %c0_62, %c0_63], %76 {strides = array<i32>} : memref<1x1x4x8x128xf32, #tpu.memory_space<vmem>>, vector<1x1x1x8x128xf32>,
    %cst_64 = arith.constant 0.000000e+00 : f32
    %77 = vector.broadcast %cst_64 : f32 to vector<32x128xf32>
    %78 = arith.select %58, %9, %77 : vector<32x128xi1>, vector<32x128xf32>
    %79 = arith.addf %55, %78 : vector<32x128xf32>
    %80 = arith.mulf %22, %28 : vector<32x128xf32>
    %c2_i32 = arith.constant 2 : i32
    %81 = vector.broadcast %c2_i32 : i32 to vector<32x128xi32>
    %82 = arith.cmpi eq, %5, %81 : vector<32x128xi32>
    %c0_65 = arith.constant 0 : index
    %c0_66 = arith.constant 0 : index
    %c2_67 = arith.constant 2 : index
    %c0_68 = arith.constant 0 : index
    %c0_69 = arith.constant 0 : index
    %83 = vector.load %arg5[%c0_65, %c0_66, %c2_67, %c0_68, %c0_69] : memref<1x1x4x8x128xf32, #tpu.memory_space<vmem>>, vector<1x1x1x8x128xf32>
    %84 = vector.shape_cast %83 : vector<1x1x1x8x128xf32> to vector<8x128xf32>
    %cst_70 = arith.constant 0.000000e+00 : f32
    %85 = vector.broadcast %cst_70 : f32 to vector<32x128xf32>
    %86 = arith.select %82, %80, %85 : vector<32x128xi1>, vector<32x128xf32>
    %87 = vector.shape_cast %86 : vector<32x128xf32> to vector<4x8x128xf32>
    %cst_71 = arith.constant dense<0.000000e+00> : vector<8x128xf32>
    %88 = vector.multi_reduction <add>, %87, %cst_71 [0] : vector<4x8x128xf32> to vector<8x128xf32>
    %89 = arith.addf %84, %88 : vector<8x128xf32>
    %c0_72 = arith.constant 0 : index
    %c0_73 = arith.constant 0 : index
    %c2_74 = arith.constant 2 : index
    %c0_75 = arith.constant 0 : index
    %c0_76 = arith.constant 0 : index
    %90 = vector.load %arg5[%c0_72, %c0_73, %c2_74, %c0_75, %c0_76] : memref<1x1x4x8x128xf32, #tpu.memory_space<vmem>>, vector<1x1x1x8x128xf32>
    %91 = vector.shape_cast %90 : vector<1x1x1x8x128xf32> to vector<8x128xf32>
    %92 = vector.shape_cast %89 : vector<8x128xf32> to vector<1x1x1x8x128xf32>
    tpu.vector_store %arg5[%c0_72, %c0_73, %c2_74, %c0_75, %c0_76], %92 {strides = array<i32>} : memref<1x1x4x8x128xf32, #tpu.memory_space<vmem>>, vector<1x1x1x8x128xf32>,
    %c0_77 = arith.constant 0 : index
    %c0_78 = arith.constant 0 : index
    %c2_79 = arith.constant 2 : index
    %c0_80 = arith.constant 0 : index
    %c0_81 = arith.constant 0 : index
    %93 = vector.load %arg6[%c0_77, %c0_78, %c2_79, %c0_80, %c0_81] : memref<1x1x4x8x128xf32, #tpu.memory_space<vmem>>, vector<1x1x1x8x128xf32>
    %94 = vector.shape_cast %93 : vector<1x1x1x8x128xf32> to vector<8x128xf32>
    %95 = vector.shape_cast %80 : vector<32x128xf32> to vector<4x8x128xf32>
    %cst_82 = arith.constant dense<0.000000e+00> : vector<8x128xf32>
    %96 = vector.multi_reduction <add>, %95, %cst_82 [0] : vector<4x8x128xf32> to vector<8x128xf32>
    %97 = arith.addf %94, %96 : vector<8x128xf32>
    %c0_83 = arith.constant 0 : index
    %c0_84 = arith.constant 0 : index
    %c2_85 = arith.constant 2 : index
    %c0_86 = arith.constant 0 : index
    %c0_87 = arith.constant 0 : index
    %98 = vector.load %arg6[%c0_83, %c0_84, %c2_85, %c0_86, %c0_87] : memref<1x1x4x8x128xf32, #tpu.memory_space<vmem>>, vector<1x1x1x8x128xf32>
    %99 = vector.shape_cast %98 : vector<1x1x1x8x128xf32> to vector<8x128xf32>
    %100 = vector.shape_cast %97 : vector<8x128xf32> to vector<1x1x1x8x128xf32>
    tpu.vector_store %arg6[%c0_83, %c0_84, %c2_85, %c0_86, %c0_87], %100 {strides = array<i32>} : memref<1x1x4x8x128xf32, #tpu.memory_space<vmem>>, vector<1x1x1x8x128xf32>,
    %cst_88 = arith.constant 0.000000e+00 : f32
    %101 = vector.broadcast %cst_88 : f32 to vector<32x128xf32>
    %102 = arith.select %82, %11, %101 : vector<32x128xi1>, vector<32x128xf32>
    %103 = arith.addf %79, %102 : vector<32x128xf32>
    %104 = arith.mulf %24, %28 : vector<32x128xf32>
    %c3_i32 = arith.constant 3 : i32
    %105 = vector.broadcast %c3_i32 : i32 to vector<32x128xi32>
    %106 = arith.cmpi eq, %5, %105 : vector<32x128xi32>
    %c0_89 = arith.constant 0 : index
    %c0_90 = arith.constant 0 : index
    %c3_91 = arith.constant 3 : index
    %c0_92 = arith.constant 0 : index
    %c0_93 = arith.constant 0 : index
    %107 = vector.load %arg5[%c0_89, %c0_90, %c3_91, %c0_92, %c0_93] : memref<1x1x4x8x128xf32, #tpu.memory_space<vmem>>, vector<1x1x1x8x128xf32>
    %108 = vector.shape_cast %107 : vector<1x1x1x8x128xf32> to vector<8x128xf32>
    %cst_94 = arith.constant 0.000000e+00 : f32
    %109 = vector.broadcast %cst_94 : f32 to vector<32x128xf32>
    %110 = arith.select %106, %104, %109 : vector<32x128xi1>, vector<32x128xf32>
    %111 = vector.shape_cast %110 : vector<32x128xf32> to vector<4x8x128xf32>
    %cst_95 = arith.constant dense<0.000000e+00> : vector<8x128xf32>
    %112 = vector.multi_reduction <add>, %111, %cst_95 [0] : vector<4x8x128xf32> to vector<8x128xf32>
    %113 = arith.addf %108, %112 : vector<8x128xf32>
    %c0_96 = arith.constant 0 : index
    %c0_97 = arith.constant 0 : index
    %c3_98 = arith.constant 3 : index
    %c0_99 = arith.constant 0 : index
    %c0_100 = arith.constant 0 : index
    %114 = vector.load %arg5[%c0_96, %c0_97, %c3_98, %c0_99, %c0_100] : memref<1x1x4x8x128xf32, #tpu.memory_space<vmem>>, vector<1x1x1x8x128xf32>
    %115 = vector.shape_cast %114 : vector<1x1x1x8x128xf32> to vector<8x128xf32>
    %116 = vector.shape_cast %113 : vector<8x128xf32> to vector<1x1x1x8x128xf32>
    tpu.vector_store %arg5[%c0_96, %c0_97, %c3_98, %c0_99, %c0_100], %116 {strides = array<i32>} : memref<1x1x4x8x128xf32, #tpu.memory_space<vmem>>, vector<1x1x1x8x128xf32>,
    %c0_101 = arith.constant 0 : index
    %c0_102 = arith.constant 0 : index
    %c3_103 = arith.constant 3 : index
    %c0_104 = arith.constant 0 : index
    %c0_105 = arith.constant 0 : index
    %117 = vector.load %arg6[%c0_101, %c0_102, %c3_103, %c0_104, %c0_105] : memref<1x1x4x8x128xf32, #tpu.memory_space<vmem>>, vector<1x1x1x8x128xf32>
    %118 = vector.shape_cast %117 : vector<1x1x1x8x128xf32> to vector<8x128xf32>
    %119 = vector.shape_cast %104 : vector<32x128xf32> to vector<4x8x128xf32>
    %cst_106 = arith.constant dense<0.000000e+00> : vector<8x128xf32>
    %120 = vector.multi_reduction <add>, %119, %cst_106 [0] : vector<4x8x128xf32> to vector<8x128xf32>
    %121 = arith.addf %118, %120 : vector<8x128xf32>
    %c0_107 = arith.constant 0 : index
    %c0_108 = arith.constant 0 : index
    %c3_109 = arith.constant 3 : index
    %c0_110 = arith.constant 0 : index
    %c0_111 = arith.constant 0 : index
    %122 = vector.load %arg6[%c0_107, %c0_108, %c3_109, %c0_110, %c0_111] : memref<1x1x4x8x128xf32, #tpu.memory_space<vmem>>, vector<1x1x1x8x128xf32>
    %123 = vector.shape_cast %122 : vector<1x1x1x8x128xf32> to vector<8x128xf32>
    %124 = vector.shape_cast %121 : vector<8x128xf32> to vector<1x1x1x8x128xf32>
    tpu.vector_store %arg6[%c0_107, %c0_108, %c3_109, %c0_110, %c0_111], %124 {strides = array<i32>} : memref<1x1x4x8x128xf32, #tpu.memory_space<vmem>>, vector<1x1x1x8x128xf32>,
    %cst_112 = arith.constant 0.000000e+00 : f32
    %125 = vector.broadcast %cst_112 : f32 to vector<32x128xf32>
    %126 = arith.select %106, %13, %125 : vector<32x128xi1>, vector<32x128xf32>
    %127 = arith.addf %103, %126 : vector<32x128xf32>
    %128 = arith.subf %30, %127 : vector<32x128xf32>
    %c0_113 = arith.constant 0 : index
    %c0_114 = arith.constant 0 : index
    %c0_115 = arith.constant 0 : index
    %c0_116 = arith.constant 0 : index
    %129 = vector.load %arg7[%c0_113, %c0_114, %c0_115, %c0_116] : memref<1x1x8x128xf32, #tpu.memory_space<vmem>>, vector<1x1x8x128xf32>
    %130 = vector.shape_cast %129 : vector<1x1x8x128xf32> to vector<8x128xf32>
    %131 = vector.shape_cast %128 : vector<32x128xf32> to vector<4x8x128xf32>
    %cst_117 = arith.constant dense<0.000000e+00> : vector<8x128xf32>
    %132 = vector.multi_reduction <add>, %131, %cst_117 [0] : vector<4x8x128xf32> to vector<8x128xf32>
    %133 = arith.addf %130, %132 : vector<8x128xf32>
    %c0_118 = arith.constant 0 : index
    %c0_119 = arith.constant 0 : index
    %c0_120 = arith.constant 0 : index
    %c0_121 = arith.constant 0 : index
    %134 = vector.load %arg7[%c0_118, %c0_119, %c0_120, %c0_121] : memref<1x1x8x128xf32, #tpu.memory_space<vmem>>, vector<1x1x8x128xf32>
    %135 = vector.shape_cast %134 : vector<1x1x8x128xf32> to vector<8x128xf32>
    %136 = vector.shape_cast %133 : vector<8x128xf32> to vector<1x1x8x128xf32>
    tpu.vector_store %arg7[%c0_118, %c0_119, %c0_120, %c0_121], %136 {strides = array<i32>} : memref<1x1x8x128xf32, #tpu.memory_space<vmem>>, vector<1x1x8x128xf32>,
    return
  }
  func.func @transform_0(%arg0: i32, %arg1: i32, %arg2: i32) -> (i32, i32, i32, i32) {
    %c1_i32 = arith.constant 1 : i32
    %0 = arith.muli %arg1, %c1_i32 : i32
    %1 = arith.addi %0, %arg2 : i32
    %c0_i32 = arith.constant 0 : i32
    %2 = arith.minsi %1, %c0_i32 : i32
    %c0_i32_0 = arith.constant 0 : i32
    %c0_i32_1 = arith.constant 0 : i32
    %c0_i32_2 = arith.constant 0 : i32
    return %arg0, %c0_i32_0, %2, %c0_i32_1 : i32, i32, i32, i32
  }
  func.func @transform_1(%arg0: i32, %arg1: i32, %arg2: i32) -> (i32, i32, i32) {
    %c1_i32 = arith.constant 1 : i32
    %0 = arith.muli %arg1, %c1_i32 : i32
    %1 = arith.addi %0, %arg2 : i32
    %c0_i32 = arith.constant 0 : i32
    %c0_i32_0 = arith.constant 0 : i32
    return %arg0, %1, %c0_i32 : i32, i32, i32
  }
  func.func @transform_2(%arg0: i32, %arg1: i32, %arg2: i32) -> (i32, i32, i32, i32, i32) {
    %c0_i32 = arith.constant 0 : i32
    %c0_i32_0 = arith.constant 0 : i32
    %c0_i32_1 = arith.constant 0 : i32
    %c0_i32_2 = arith.constant 0 : i32
    return %arg0, %arg1, %c0_i32, %c0_i32_0, %c0_i32_1 : i32, i32, i32, i32, i32
  }
  func.func @transform_3(%arg0: i32, %arg1: i32, %arg2: i32) -> (i32, i32, i32, i32, i32) {
    %c0_i32 = arith.constant 0 : i32
    %c0_i32_0 = arith.constant 0 : i32
    %c0_i32_1 = arith.constant 0 : i32
    %c0_i32_2 = arith.constant 0 : i32
    return %arg0, %arg1, %c0_i32, %c0_i32_0, %c0_i32_1 : i32, i32, i32, i32, i32
  }
  func.func @transform_4(%arg0: i32, %arg1: i32, %arg2: i32) -> (i32, i32, i32, i32) {
    %c0_i32 = arith.constant 0 : i32
    %c0_i32_0 = arith.constant 0 : i32
    %c0_i32_1 = arith.constant 0 : i32
    return %arg0, %arg1, %c0_i32, %c0_i32_0 : i32, i32, i32, i32
  }
}

</mosaic_0001>

<bundles_post_ra>
// kernel: tpu_custom_call.1
= control target key start
LH: loop header
LB: loop body
LE: loop exit
PB: predicated region body
PF: predicated region fallthrough
CT: control target
= control target key end

     0   :  { %s1823_s0 = inlined_call_operand.hbm [shape: f32[2,4,32,128], index: 0, kind: input, shape index: {}]   ;;  %s1824_s1 = inlined_call_operand.hbm [shape: s8[2,32,128], index: 1, kind: input, shape index: {}]   ;;  %s1825_s2 = inlined_call_operand.hbm [shape: f32[2,1,4,8,128], index: 2, kind: output, shape index: {0}]   ;;  %s1826_s3 = inlined_call_operand.hbm [shape: f32[2,1,4,8,128], index: 3, kind: output, shape index: {1}]   ;;  %s1827_s4 = inlined_call_operand.hbm [shape: f32[2,1,8,128], index: 4, kind: output, shape index: {2}]  }
   0x1   :  { %1831 = sst [smem:[#allocation15_spill]] %s1823_s0 }
   0x2   :  { %10 = vsyncpa [#allocation3], 0 }
   0x3   :  { %12 = vsyncpa [#allocation3 + $0x1], 0 }
   0x4   :  { %13 = vsyncpa [#allocation6], 0 }
   0x5   :  { %15 = vsyncpa [#allocation6 + $0x1], 0 }
   0x6   :  { %16 = vsyncpa [#allocation4], 0 }
   0x7   :  { %18 = vsyncpa [#allocation4 + $0x1], 0 }
   0x8   :  { %19 = vsyncpa [#allocation9], 0 }
   0x9   :  { %21 = vsyncpa [#allocation9 + $0x1], 0  ;;  %s1251_s15 = smov 0   ;;  %s1253_s16 = smov 0  }
   0xa   :  { %s1255_s17 = smov 0   ;;  %s1257_s18 = smov 0  }
   0xb   :  { %s1259_s19 = smov 0   ;;  %s1261_s20 = smov 0  }
   0xc LB: > { %s1282_s21 = sadd.s32 4294967295, %s1215_s20   ;;  %s1829_s22 = sadd.s32 4294967294, %s1215_s20   ;;  %s1215_s20 = sphi %s1261_s20, %s27_s20   ;;  %s1211_s19 = sphi %s1259_s19, %s1850_s19   ;;  %s1207_s18 = sphi %s1257_s18, %s1849_s18   ;;  %s1203_s17 = sphi %s1255_s17, %s1848_s17   ;;  %s1199_s16 = sphi %s1253_s16, %s1847_s16   ;;  %s1195_s15 = sphi %s1251_s15, %s1846_s15  }
   0xd   : > { %s46_s23 = sadd.s32 1, %s1211_s19  ;;  %s61_s24 = sadd.s32 1, %s1203_s17 }
   0xe   : > { %p48_p0 = scmp.ge.s32.totalorder %s46_s23, 2  ;;  %p68_p1 = scmp.ne.s32.totalorder %s1203_s17, %s1199_s16 }
   0xf   : > { %p69_p2 = scmp.eq.s32.totalorder %s1215_s20, 0  ;;  %p74_p3 = scmp.ne.s32.totalorder %s1199_s16, %s1195_s15 }
  0x10   : > { %s1852_s23 = smov (%p48_p0, %s46_s23), 0  ;;  %p75_p5 = scmp.eq.s32.totalorder %s1282_s21, 0 }
  0x11   : > { %p1294_p4 = por %p69_p2, %p68_p1  ;;  %s56_s26 = ssub.s32 %s1211_s19, %s1852_s23 }
  0x12   : > { %p130_p6 = scmp.eq.s32.totalorder %s1282_s21, 1  ;;  %p59_p7 = scmp.eq.s32.totalorder %s56_s26, 0 }
  0x13   : > { %p1302_p8 = por %p75_p5, %p74_p3  ;;  %p136_p10 = scmp.eq.s32.totalorder %s1829_s22, 1 }
  0x14   : > { %p1306_p9 = por %p130_p6, %p68_p1  ;;  %p906_p13 = scmp.lt.s32.totalorder %s1215_s20, 2 }
  0x15   : > { %s1833_s27 = scalar_select %p1302_p8, 1, 0 }
  0x16   : > { %s1834_s28 = scalar_select %p1306_p9, 1, 0 }
  0x17   : > { %s1313_s29 = scalar_select %p59_p7, %s1203_s17, %s61_s24  }
  0x18   : > { %p1315_p11 = por %p136_p10, %p74_p3  ;;  %s1322_s5 = sand.u32 1, %s1203_s17  }
  0x19   : > { %s831_s6 = sshll.u32 %s1322_s5, 7  ;;  %s876_s7 = sshll.u32 %s1211_s19, 11 }
  0x1a   : > { %s1835_s30 = scalar_select %p1315_p11, 1, 0 }
  0x1b   : > { %s1836_s0 = sld [smem:[#allocation15_spill]]  ;;  %s216_s11 = scalar_lea.vmem [#allocation2], %s831_s6 }
  0x1c   : > { %s228_s12 = sshll.u32 %s216_s11, 4  ;;  %p1335_p0 = pnand %p906_p13, %p1294_p4  ;;  %s1331_s12 = int_to_ptr.vmem [resolvable:$true] %s228_s12 }
  0x1d   : > { %s213_s14 = scalar_lea.sflag [#allocation3], %s1322_s5 }
  0x1e   : > { %p1011_p3 = pneg %p1335_p0 }
  0x21   : > { %s1329_s10 = scalar_lea.hbm %s1836_s0, %s876_s7  ;;  %s1014_s25 = scalar_lea.hbm %s1836_s0, 4096 }
  0x22   : > { %s1009_s24 = scalar_lea.hbm %s1329_s10, 2048  ;;  %p1015_p4 = scmp.lt.u32.totalorder %s1329_s10, %s1836_s0 }
  0x23   : > { %p1010_p2 = scmp.ne.s32.totalorder %s1329_s10, %s1009_s24  ;;  %p1016_p7 = scmp.lt.u32.totalorder %s1014_s25, %s1009_s24 }
  0x24   : > { %p1018_p13 = scmp.lt.u32.totalorder %s1009_s24, %s1329_s10 }
  0x25   : > { %p1012_p5 = pnand %p1011_p3, %p1010_p2  ;;  %p1017_p10 = por %p1016_p7, %p1015_p4 }
  0x27   : > { %p1013_p6 = pneg %p1012_p5  ;;  %p1019_p12 = por %p1018_p13, %p1017_p10 }
  0x29   : > { %p1020_p1 = pnand %p1019_p12, %p1013_p6 }
  0x2b   : > { %1023 = shalt.err (!%p1020_p1)
}
  0x2c   : > { %s1024_s9 = scalar_lea.vmem %s1331_s12, 2048  ;;  %s1217_s11 = smov [#allocation2]  }
  0x2d   : > { %p1025_p2 = scmp.ne.s32.totalorder %s1331_s12, %s1024_s9  ;;  %s1029_s26 = sshll.u32 %s1217_s11, 4  ;;  %s1030_s26 = int_to_ptr.vmem [resolvable:$false] %s1029_s26 }
  0x2e   : > { %s1031_s6 = scalar_lea.vmem %s1030_s26, 4096  ;;  %p1032_p9 = scmp.lt.s32.totalorder %s1331_s12, %s1030_s26 }
  0x2f   : > { %p1027_p5 = pnand %p1025_p2, %p1011_p3  ;;  %p1033_p4 = scmp.lt.s32.totalorder %s1031_s6, %s1024_s9 }
  0x31   : > { %p1028_p11 = pneg %p1027_p5  ;;  %p1034_p7 = por %p1033_p4, %p1032_p9 }
  0x33   : > { %p1035_p10 = pnand %p1034_p7, %p1028_p11 }
  0x35   : > { %1038 = shalt.err (!%p1035_p10)
}
  0x36   : > { %s1218_s24 = smov 128   ;;  %s1219_s25 = smov 8  }
  0x37   : > { %892 = dma.hbm_to_vmem [thread:$0]  (!%p1335_p0), %s1329_s10, 2048, %s1331_s12, %s213_s14, %s1218_s24, %s1218_s24, %s1219_s25  }
  0x38   : > { %p256_p12 = scmp.lt.s32.totalorder %s1215_s20, 3  ;;  %s834_s7 = sshll.u32 %s1322_s5, 3 }
  0x39   : > { %s835_s8 = sshll.u32 %s1211_s19, 7  ;;  %p1838_p9 = scmp.ge.s32.totalorder %s1215_s20, 1 }
  0x3a   : > { %s1380_s6 = scalar_lea.hbm %s1824_s1, %s835_s8  ;;  %s242_s22 = scalar_lea.vmem [#allocation5], %s834_s7 }
  0x3b   : > { %p1373_p11 = pnand %p1838_p9, %p256_p12  ;;  %s251_s0 = sshll.u32 %s242_s22, 4  ;;  %s252_s0 = int_to_ptr.vmem [resolvable:$true] %s251_s0 }
  0x3c   : > { %s239_s10 = scalar_lea.sflag [#allocation6], %s1322_s5  ;;  %s1039_s12 = scalar_lea.hbm %s1380_s6, 128 }
  0x3d   : > { %s1839_s9 = scalar_select %p1373_p11, 1, 0 }
  0x3e   : > { %p1040_p1 = scmp.ne.s32.totalorder %s1380_s6, %s1039_s12  ;;  %s1044_s25 = scalar_lea.hbm %s1824_s1, 256 }
  0x3f   : > { %p1045_p2 = scmp.lt.u32.totalorder %s1380_s6, %s1824_s1  ;;  %p1046_p5 = scmp.lt.u32.totalorder %s1044_s25, %s1039_s12 }
  0x40   : > { %p1042_p6 = pnand %p1040_p1, %p1011_p3  ;;  %p1048_p7 = scmp.lt.u32.totalorder %s1039_s12, %s1380_s6 }
  0x41   : > { %p1047_p4 = por %p1046_p5, %p1045_p2 }
  0x42   : > { %p1043_p13 = pneg %p1042_p6 }
  0x43   : > { %p1049_p10 = por %p1048_p7, %p1047_p4 }
  0x45   : > { %p1050_p12 = pnand %p1049_p10, %p1043_p13 }
  0x47   : > { %1053 = shalt.err (!%p1050_p12)
}
  0x48   : > { %s1054_s22 = scalar_lea.vmem %s252_s0, 128  ;;  %s1220_s5 = smov [#allocation5]  }
  0x49   : > { %p1055_p9 = scmp.ne.s32.totalorder %s252_s0, %s1054_s22  ;;  %s1059_s7 = sshll.u32 %s1220_s5, 4  ;;  %s1060_s7 = int_to_ptr.vmem [resolvable:$false] %s1059_s7 }
  0x4a   : > { %s1061_s26 = scalar_lea.vmem %s1060_s7, 256  ;;  %p1062_p8 = scmp.lt.s32.totalorder %s252_s0, %s1060_s7 }
  0x4b   : > { %p1057_p1 = pnand %p1055_p9, %p1011_p3  ;;  %p1063_p11 = scmp.lt.s32.totalorder %s1061_s26, %s1054_s22 }
  0x4d   : > { %p1058_p6 = pneg %p1057_p1  ;;  %p1064_p2 = por %p1063_p11, %p1062_p8 }
  0x4f   : > { %p1065_p5 = pnand %p1064_p2, %p1058_p6 }
  0x51   : > { %1068 = shalt.err (!%p1065_p5)
}
  0x52   : > { %895 = dma.hbm_to_vmem [thread:$0]  (!%p1335_p0), %s1380_s6, 128, %s252_s0, %s239_s10  }
  0x53   : > { %p1840_p13 = scmp.ne.s32.totalorder %s1839_s9, 0 }
  0x54   : > { %s1405_s12 = sand.u32 (!%p1840_p13), 1, %s1199_s16   ;;  %p1841_p3 = scmp.ne.s32.totalorder (!%p1840_p13), %s1833_s27, 0 }
  0x55   : > { %260 = sbr.rel (%p1840_p13) target bundleno = 219 (0xdb), region = 28  ;;  %s837_s14 = sshll.u32 (!%p1840_p13), %s1405_s12, 7 }
  0x56   : > { %s263_s24 = scalar_lea.sflag (!%p1840_p13), [#allocation3], %s1405_s12  ;;  %s266_s25 = scalar_lea.vmem (!%p1840_p13), [#allocation2], %s837_s14 }
  0x5c   : > { %1178 = dma.done.wait (%p1841_p3), %s263_s24, 2048  }
  0x5d   : > { %1180 = vsyncadd (%p1841_p3), %s263_s24, 4294965248  ;;  %s838_s0 = sshll.u32 %s1405_s12, 3  ;;  %s272_s13 = scalar_lea.sflag [#allocation6], %s1405_s12 }
  0x5e   : > { %s1417_s9 = scalar_lea.vmem [#allocation5], %s838_s0 }
  0x5f   : > { %1182 = dma.done.wait (%p1841_p3), %s272_s13, 128  }
  0x60   : > { %1184 = vsyncadd (%p1841_p3), %s272_s13, 4294967168  ;;  %v1423_v0 = vld [vmem:[%s266_s25] sm:$0xff]  ;;  %v1425_v1 = vld [vmem:[%s266_s25 + $0x8] sm:$0xff]  ;;  %s839_s27 = sshll.u32 %s1405_s12, 5  ;;  %s594_s6 = sand.u32 1, %s1282_s21  }
  0x61   : > { %v1427_v2 = vld [vmem:[%s266_s25 + $0x10] sm:$0xff]  ;;  %v1429_v3 = vld [vmem:[%s266_s25 + $0x18] sm:$0xff]  ;;  %v1431_v4 = vld [vmem:[%s266_s25 + $0x20] sm:$0xff]  ;;  %s877_s10 = sshll.u32 %s1207_s18, 9  ;;  %s307_s8 = scalar_lea.vmem [#allocation8], %s839_s27 }
  0x62   : > { %v1433_v5 = vld [vmem:[%s266_s25 + $0x28] sm:$0xff]  ;;  %v1435_v6 = vld [vmem:[%s266_s25 + $0x30] sm:$0xff]  ;;  %v1437_v7 = vld [vmem:[%s266_s25 + $0x38] sm:$0xff]  ;;  %v357_v9 = vmax.f32 %v1423_v0, %v1431_v4  ;;  %s633_s11 = sshll.u32 %s307_s8, 4  ;;  %s1676_s7 = scalar_lea.hbm %s1826_s3, %s877_s10  ;;  %s1678_s11 = int_to_ptr.vmem [resolvable:$true] %s633_s11 }
  0x63   : > { %v1439_v8 = vld [vmem:[%s266_s25 + $0x40] sm:$0xff]  ;;  %v358_v10 = vmax.f32 %v1425_v1, %v1433_v5  ;;  %v1445_v11 = vld [vmem:[%s266_s25 + $0x48] sm:$0xff]  ;;  %v1447_v12 = vld [vmem:[%s266_s25 + $0x50] sm:$0xff]  ;;  %v359_v14 = vmax.f32 %v1427_v2, %v1435_v6  ;;  %v360_v15 = vmax.f32 %v1429_v3, %v1437_v7  ;;  %s1696_s26 = scalar_lea.sflag [#allocation9], %s594_s6  ;;  %s1069_s14 = scalar_lea.vmem %s1678_s11, 512 }
  0x64   : > { %v1449_v13 = vld [vmem:[%s266_s25 + $0x58] sm:$0xff]  ;;  %v1455_v16 = vld [vmem:[%s266_s25 + $0x60] sm:$0xff]  ;;  %v1457_v17 = vld [vmem:[%s266_s25 + $0x68] sm:$0xff]  ;;  %v361_v19 = vmax.f32 %v357_v9, %v1439_v8  ;;  %p1070_p8 = scmp.ne.s32.totalorder %s1678_s11, %s1069_s14  ;;  %p1842_p0 = scmp.ne.s32.totalorder %s1834_s28, 0 }
  0x65   : > { %v1459_v18 = vld [vmem:[%s266_s25 + $0x70] sm:$0xff]  ;;  %v362_v20 = vmax.f32 %v358_v10, %v1445_v11  ;;  %v1463_v21 = vld [vmem:[%s266_s25 + $0x78] sm:$0xff]  ;;  %v363_v22 = vmax.f32 %v359_v14, %v1447_v12  ;;  %v364_v23 = vmax.f32 %v360_v15, %v1449_v13  ;;  %v333_v62 = vld [vmem:[%s1417_s9] sm:$0xff]  ;;  %s1221_s24 = smov [#allocation8]  }
  0x66   : > { %v1468_v24 = vmax.f32 %v361_v19, %v1455_v16  ;;  %v1522_v14 = vunpack.c.0.s8 %v333_v62  ;;  %p1071_p11 = pnand %p1070_p8, %p1842_p0  ;;  %s1073_s25 = sshll.u32 %s1221_s24, 4  ;;  %s1074_s25 = int_to_ptr.vmem [resolvable:$false] %s1073_s25 }
  0x67   : > { %v1471_v25 = vmax.f32 %v362_v20, %v1457_v17  ;;  %v1474_v26 = vmax.f32 %v363_v22, %v1459_v18  ;;  %v1477_v27 = vmax.f32 %v364_v23, %v1463_v21  ;;  %v1528_v20 = vunpack.c.1.s8 %v333_v62  ;;  %s1075_s13 = scalar_lea.vmem %s1074_s25, 1024  ;;  %p1076_p7 = scmp.lt.s32.totalorder %s1678_s11, %s1074_s25 }
  0x68   : > { %v369_v28 = vsub.f32 %v1423_v0, %v1468_v24  ;;  %v381_v30 = vsub.f32 %v1431_v4, %v1468_v24  ;;  %v393_v41 = vsub.f32 %v1439_v8, %v1468_v24  ;;  %v405_v49 = vsub.f32 %v1455_v16, %v1468_v24  ;;  %p1072_p4 = pneg %p1071_p11  ;;  %p1077_p10 = scmp.lt.s32.totalorder %s1075_s13, %s1069_s14 }
  0x69   : > { %v370_v29 = vsub.f32 %v1425_v1, %v1471_v25  ;;  %v371_v31 = vsub.f32 %v1427_v2, %v1474_v26  ;;  %v372_v32 = vsub.f32 %v1429_v3, %v1477_v27  ;;  %v382_v33 = vsub.f32 %v1433_v5, %v1471_v25 }
  0x6a   : > { %v373_v34 = vmul.f32 1.442695, %v369_v28  ;;  %v383_v36 = vsub.f32 %v1435_v6, %v1474_v26  ;;  %v384_v39 = vsub.f32 %v1437_v7, %v1477_v27  ;;  %v385_v40 = vmul.f32 1.442695, %v381_v30  ;;  %p1078_p12 = por %p1077_p10, %p1076_p7 }
  0x6b   : > { %v375_v35 = vmul.f32 1.442695, %v370_v29  ;;  %v377_v37 = vmul.f32 1.442695, %v371_v31  ;;  %v379_v38 = vmul.f32 1.442695, %v372_v32  ;;  %v394_v43 = vsub.f32 %v1445_v11, %v1471_v25 }
  0x6c   : > { %961 = vpow2.f32 %v373_v34  ;;  %v387_v42 = vmul.f32 1.442695, %v382_v33  ;;  %v389_v44 = vmul.f32 1.442695, %v383_v36  ;;  %v395_v45 = vsub.f32 %v1447_v12, %v1474_v26  ;;  %p1079_p9 = pnand %p1078_p12, %p1072_p4 }
  0x6d   : > { %963 = vpow2.f32 %v375_v35  ;;  %v391_v46 = vmul.f32 1.442695, %v384_v39  ;;  %v396_v47 = vsub.f32 %v1449_v13, %v1477_v27  ;;  %v397_v48 = vmul.f32 1.442695, %v393_v41 }
  0x6e   : > { %965 = vpow2.f32 %v377_v37  ;;  %v399_v50 = vmul.f32 1.442695, %v394_v43  ;;  %v406_v51 = vsub.f32 %v1457_v17, %v1471_v25  ;;  %v401_v52 = vmul.f32 1.442695, %v395_v45 }
  0x6f   : > { %967 = vpow2.f32 %v379_v38  ;;  %v407_v53 = vsub.f32 %v1459_v18, %v1474_v26  ;;  %v403_v54 = vmul.f32 1.442695, %v396_v47  ;;  %v408_v55 = vsub.f32 %v1463_v21, %v1477_v27 }
  0x70   : > { %969 = vpow2.f32 %v385_v40  ;;  %v409_v56 = vmul.f32 1.442695, %v405_v49  ;;  %v411_v57 = vmul.f32 1.442695, %v406_v51  ;;  %v1530_v22 = vunpack.c.2.s8 %v333_v62 }
  0x71   : > { %971 = vpow2.f32 %v387_v42  ;;  %v413_v59 = vmul.f32 1.442695, %v407_v53  ;;  %v415_v61 = vmul.f32 1.442695, %v408_v55  ;;  %v1536_v29 = vunpack.c.3.s8 %v333_v62 }
  0x72   : > { %973 = vpow2.f32 %v389_v44  ;;  %vm449_vm0 = vcmp.eq.s32.totalorder %v1522_v14, 0  ;;  %vm450_vm1 = vcmp.eq.s32.totalorder %v1528_v20, 0  ;;  %vm451_vm2 = vcmp.eq.s32.totalorder %v1530_v22, 0 }
  0x73   : > { %975 = vpow2.f32 %v391_v46  ;;  %vm452_vm3 = vcmp.eq.s32.totalorder %v1536_v29, 0  ;;  %vm481_vm4 = vcmp.eq.s32.totalorder %v1522_v14, 1  ;;  %vm482_vm5 = vcmp.eq.s32.totalorder %v1528_v20, 1 }
  0x74   : > { %977 = vpow2.f32 %v397_v48  ;;  %vm483_vm6 = vcmp.eq.s32.totalorder %v1530_v22, 1  ;;  %v469_v42 = vsel %vm449_vm0, %v1423_v0, 0.0  ;;  %v470_v43 = vsel %vm450_vm1, %v1425_v1, 0.0 }
  0x75   : > { %979 = vpow2.f32 %v399_v50  ;;  %v471_v44 = vsel %vm451_vm2, %v1427_v2, 0.0  ;;  %v472_v47 = vsel %vm452_vm3, %v1429_v3, 0.0  ;;  %vm484_vm7 = vcmp.eq.s32.totalorder %v1536_v29, 1 }
  0x76   : > { %v1511_v58 = vpop.eup %961  ;;  %981 = vpow2.f32 %v401_v52  ;;  %v503_v0 = vsel %vm481_vm4, %v1431_v4, 0.0  ;;  %v504_v1 = vsel %vm482_vm5, %v1433_v5, 0.0  ;;  %v505_v2 = vsel %vm483_vm6, %v1435_v6, 0.0 }
  0x77   : > { %v1513_v60 = vpop.eup %963  ;;  %983 = vpow2.f32 %v403_v54  ;;  %vm515_vm8 = vcmp.eq.s32.totalorder %v1522_v14, 2  ;;  %vm516_vm9 = vcmp.eq.s32.totalorder %v1528_v20, 2  ;;  %vm517_vm10 = vcmp.eq.s32.totalorder %v1530_v22, 2 }
  0x78   : > { %v1516_v63 = vpop.eup %965  ;;  %985 = vpow2.f32 %v409_v56  ;;  %v506_v51 = vsel %vm484_vm7, %v1437_v7, 0.0  ;;  %v507_v5 = vadd.f32 %v503_v0, %v469_v42  ;;  %v508_v52 = vadd.f32 %v504_v1, %v470_v43 }
  0x79   : > { %v1518_v9 = vpop.eup %967  ;;  %987 = vpow2.f32 %v411_v57  ;;  %v509_v53 = vadd.f32 %v505_v2, %v471_v44  ;;  %vm518_vm11 = vcmp.eq.s32.totalorder %v1536_v29, 2  ;;  %v537_v6 = vsel %vm515_vm8, %v1439_v8, 0.0 }
  0x7a   : > { %v1520_v10 = vpop.eup %969  ;;  %989 = vpow2.f32 %v413_v59  ;;  %v538_v54 = vsel %vm516_vm9, %v1445_v11, 0.0  ;;  %v539_v55 = vsel %vm517_vm10, %v1447_v12, 0.0  ;;  %vm549_vm12 = vcmp.eq.s32.totalorder %v1522_v14, 3 }
  0x7b   : > { %v1524_v15 = vpop.eup %971  ;;  %991 = vpow2.f32 %v415_v61  ;;  %v417_v19 = vadd.f32 %v1520_v10, %v1511_v58  ;;  %vm550_vm13 = vcmp.eq.s32.totalorder %v1528_v20, 3  ;;  %vm551_vm14 = vcmp.eq.s32.totalorder %v1530_v22, 3 }
  0x7c   : > { %v1532_v23 = vpop.eup %973  ;;  %v418_v28 = vadd.f32 %v1524_v15, %v1513_v60  ;;  %v510_v7 = vadd.f32 %v506_v51, %v472_v47  ;;  %v540_v56 = vsel %vm518_vm11, %v1449_v13, 0.0  ;;  %v541_v8 = vadd.f32 %v537_v6, %v507_v5 }
  0x7d   : > { %v1538_v30 = vpop.eup %975  ;;  %v419_v31 = vadd.f32 %v1532_v23, %v1516_v63  ;;  %v542_v57 = vadd.f32 %v538_v54, %v508_v52  ;;  %v543_v59 = vadd.f32 %v539_v55, %v509_v53  ;;  %vm552_vm15 = vcmp.eq.s32.totalorder %v1536_v29, 3 }
  0x7e   : > { %v1542_v32 = vpop.eup %977  ;;  %v420_v33 = vadd.f32 %v1538_v30, %v1518_v9  ;;  %v571_v11 = vsel %vm549_vm12, %v1455_v16, 0.0  ;;  %v572_v12 = vsel %vm550_vm13, %v1457_v17, 0.0  ;;  %v573_v61 = vsel %vm551_vm14, %v1459_v18, 0.0 }
  0x7f   : > { %v1546_v34 = vpop.eup %979  ;;  %v421_v35 = vadd.f32 %v1542_v32, %v417_v19  ;;  %v1617_v13 = vadd.f32 %v540_v56, %v510_v7  ;;  %v1622_v62 = vsel %vm552_vm15, %v1463_v21, 0.0  ;;  %v1624_v19 = vadd.f32 %v571_v11, %v541_v8 }
  0x80   : > { %v1552_v36 = vpop.eup %981  ;;  %v422_v37 = vadd.f32 %v1546_v34, %v418_v28  ;;  %v1626_v17 = vadd.f32 %v572_v12, %v542_v57  ;;  %v1628_v28 = vadd.f32 %v573_v61, %v543_v59 }
  0x81   : > { %v1557_v38 = vpop.eup %983  ;;  %v423_v39 = vadd.f32 %v1552_v36, %v419_v31 }
  0x82   : > { %v986_v40 = vpop.eup %985  ;;  %v424_v41 = vadd.f32 %v1557_v38, %v420_v33 }
  0x83   : > { %v988_v45 = vpop.eup %987  ;;  %v425_v46 = vadd.f32 %v986_v40, %v421_v35 }
  0x84   : > { %v990_v48 = vpop.eup %989  ;;  %v426_v49 = vadd.f32 %v988_v45, %v422_v37 }
  0x85   : > { %v992_v50 = vpop.eup %991  ;;  %v427_v3 = vadd.f32 %v990_v48, %v423_v39  ;;  %993 = vrcp.f32 %v425_v46 }
  0x86   : > { %v428_v4 = vadd.f32 %v992_v50, %v424_v41  ;;  %995 = vrcp.f32 %v426_v49 }
  0x87   : > { %997 = vrcp.f32 %v427_v3 }
  0x88   : > { %999 = vrcp.f32 %v428_v4 }
  0x89   : > { %1001 = vlog2.f32 %v425_v46 }
  0x8a   : > { %1003 = vlog2.f32 %v426_v49 }
  0x8b   : > { %1005 = vlog2.f32 %v427_v3 }
  0x8c   : > { %1007 = vlog2.f32 %v428_v4 }
  0x8f   : > { %v994_v16 = vpop.eup %993 }
  0x90   : > { %v996_v18 = vpop.eup %995  ;;  %v445_v31 = vmul.f32 %v994_v16, %v1511_v58  ;;  %v477_v33 = vmul.f32 %v994_v16, %v1520_v10  ;;  %v511_v35 = vmul.f32 %v994_v16, %v1542_v32  ;;  %v545_v37 = vmul.f32 %v994_v16, %v986_v40 }
  0x91   : > { %v998_v39 = vpop.eup %997  ;;  %v446_v21 = vmul.f32 %v996_v18, %v1513_v60  ;;  %v478_v41 = vmul.f32 %v996_v18, %v1524_v15  ;;  %v512_v42 = vmul.f32 %v996_v18, %v1546_v34  ;;  %v546_v43 = vmul.f32 %v996_v18, %v988_v45 }
  0x92   : > { %v1000_v44 = vpop.eup %999  ;;  %v447_v46 = vmul.f32 %v998_v39, %v1516_v63  ;;  %v479_v58 = vmul.f32 %v998_v39, %v1532_v23  ;;  %v513_v10 = vmul.f32 %v998_v39, %v1552_v36  ;;  %v547_v47 = vmul.f32 %v998_v39, %v990_v48 }
  0x93   : > { %v448_v32 = vmul.f32 %v1000_v44, %v1518_v9  ;;  %v464_v40 = vadd.f32 %v446_v21, %v445_v31  ;;  %v480_v0 = vmul.f32 %v1000_v44, %v1538_v30  ;;  %v498_v60 = vadd.f32 %v478_v41, %v477_v33  ;;  %v1648_v9 = vpop.eup %1001 }
  0x94   : > { %v514_v15 = vmul.f32 %v1000_v44, %v1557_v38  ;;  %v532_v49 = vadd.f32 %v512_v42, %v511_v35  ;;  %v548_v34 = vmul.f32 %v1000_v44, %v992_v50  ;;  %v566_v45 = vadd.f32 %v546_v43, %v545_v37  ;;  %v1654_v50 = vpop.eup %1003 }
  0x95   : > { %v465_v1 = vadd.f32 %v464_v40, %v447_v46  ;;  %v499_v63 = vadd.f32 %v498_v60, %v479_v58  ;;  %v454_v23 = vsel %vm449_vm0, %v445_v31, 0.0  ;;  %v455_v36 = vsel %vm450_vm1, %v446_v21, 0.0  ;;  %v1661_v52 = vpop.eup %1005 }
  0x96   : > { %v533_v30 = vadd.f32 %v532_v49, %v513_v10  ;;  %v567_v48 = vadd.f32 %v566_v45, %v547_v47  ;;  %v456_v38 = vsel %vm451_vm2, %v447_v46, 0.0  ;;  %v457_v2 = vsel %vm452_vm3, %v448_v32, 0.0  ;;  %v1008_v7 = vpop.eup %1007 }
  0x97   : > { %v466_v3 = vadd.f32 %v465_v1, %v448_v32  ;;  %v500_v4 = vadd.f32 %v499_v63, %v480_v0  ;;  %v458_v51 = vadd.f32 %v455_v36, %v454_v23  ;;  %v487_v5 = vsel %vm481_vm4, %v477_v33, 0.0 }
  0x98   : > { %v534_v53 = vadd.f32 %v533_v30, %v514_v15  ;;  %v568_v6 = vadd.f32 %v567_v48, %v548_v34  ;;  %v488_v54 = vsel %vm482_vm5, %v478_v41, 0.0  ;;  %v489_v55 = vsel %vm483_vm6, %v479_v58, 0.0 }
  0x99   : > { %v459_v56 = vadd.f32 %v458_v51, %v456_v38  ;;  %v490_v8 = vsel %vm484_vm7, %v480_v0, 0.0  ;;  %v491_v57 = vadd.f32 %v488_v54, %v487_v5  ;;  %v521_v59 = vsel %vm515_vm8, %v511_v35, 0.0  ;;  %468 = vst [vmem:[%s307_s8] sm:$0xff] %v466_v3  ;;  %857 = vst [vmem:[%s307_s8 + $0x8] sm:$0xff] %v500_v4 }
  0x9a   : > { %v522_v12 = vsel %vm516_vm9, %v512_v42, 0.0  ;;  %v523_v61 = vsel %vm517_vm10, %v513_v10, 0.0  ;;  %v524_v16 = vsel %vm518_vm11, %v514_v15, 0.0  ;;  %861 = vst [vmem:[%s307_s8 + $0x10] sm:$0xff] %v534_v53  ;;  %865 = vst [vmem:[%s307_s8 + $0x18] sm:$0xff] %v568_v6  ;;  %v555_v33 = vsel %vm549_vm12, %v545_v37, 0.0 }
  0x9b   : > { %v460_v11 = vadd.f32 %v459_v56, %v457_v2  ;;  %v492_v18 = vadd.f32 %v491_v57, %v489_v55  ;;  %v525_v31 = vadd.f32 %v522_v12, %v521_v59  ;;  %v556_v35 = vsel %vm550_vm13, %v546_v43, 0.0 }
  0x9c   : > { %v557_v39 = vsel %vm551_vm14, %v547_v47, 0.0  ;;  %v558_v21 = vsel %vm552_vm15, %v548_v34, 0.0  ;;  %v559_v41 = vadd.f32 %v556_v35, %v555_v33 }
  0x9d   : > { %1082 = shalt.err (!%p1079_p9)
}
  0x9e   : > { %s1083_s21 = scalar_lea.hbm %s1676_s7, 512  ;;  %s1087_s8 = scalar_lea.hbm %s1826_s3, 1024 }
  0x9f   : > { %p1084_p1 = scmp.ne.s32.totalorder %s1676_s7, %s1083_s21  ;;  %p1088_p5 = scmp.lt.u32.totalorder %s1676_s7, %s1826_s3 }
  0xa0   : > { %p1089_p13 = scmp.lt.u32.totalorder %s1087_s8, %s1083_s21  ;;  %p1091_p8 = scmp.lt.u32.totalorder %s1083_s21, %s1676_s7 }
  0xa1   : > { %p1085_p6 = pnand %p1084_p1, %p1842_p0 }
  0xa2   : > { %p1090_p3 = por %p1089_p13, %p1088_p5 }
  0xa3   : > { %p1086_p2 = pneg %p1085_p6 }
  0xa4   : > { %p1092_p11 = por %p1091_p8, %p1090_p3 }
  0xa6   : > { %p1093_p4 = pnand %p1092_p11, %p1086_p2 }
  0xa8   : > { %1096 = shalt.err (!%p1093_p4)
}
  0xa9   : > { %s1222_s14 = smov 128   ;;  %s1223_s24 = smov 8   ;;  %v493_v14 = vadd.f32 %v492_v18, %v490_v8  ;;  %v526_v20 = vadd.f32 %v525_v31, %v523_v61  ;;  %v434_v22 = vmul.f32 0.6931472, %v1648_v9  ;;  %v436_v29 = vmul.f32 0.6931472, %v1654_v50 }
  0xaa   : > { %884 = dma.vmem_to_hbm [thread:$0]  (%p1842_p0), %s1678_s11, 512, %s1676_s7, %s1696_s26, %s1222_s14, %s1222_s14, %s1223_s24   ;;  %v560_v37 = vadd.f32 %v559_v41, %v557_v39  ;;  %v438_v42 = vmul.f32 0.6931472, %v1661_v52  ;;  %v440_v43 = vmul.f32 0.6931472, %v1008_v7  ;;  %v578_v44 = vadd.f32 %v1622_v62, %v1617_v13 }
  0xab   : > { %s300_s25 = scalar_lea.vmem [#allocation7], %s839_s27  ;;  %v527_v46 = vadd.f32 %v526_v20, %v524_v16  ;;  %v441_v58 = vadd.f32 %v434_v22, %v1468_v24  ;;  %v442_v10 = vadd.f32 %v436_v29, %v1471_v25  ;;  %s1742_s13 = scalar_lea.hbm %s1825_s2, %s877_s10 }
  0xac   : > { %462 = vst [vmem:[%s300_s25] sm:$0xff] %v460_v11  ;;  %s615_s11 = sshll.u32 %s300_s25, 4  ;;  %v561_v47 = vadd.f32 %v560_v37, %v558_v21  ;;  %v443_v32 = vadd.f32 %v438_v42, %v1474_v26  ;;  %v444_v40 = vadd.f32 %v440_v43, %v1477_v27  ;;  %855 = vst [vmem:[%s300_s25 + $0x8] sm:$0xff] %v493_v14  ;;  %s590_s21 = scalar_lea.sflag [#allocation4], %s1405_s12  ;;  %s1744_s11 = int_to_ptr.vmem [resolvable:$true] %s615_s11 }
  0xad   : > { %v579_v0 = vsub.f32 %v441_v58, %v1624_v19  ;;  %v580_v60 = vsub.f32 %v442_v10, %v1626_v17  ;;  %859 = vst [vmem:[%s300_s25 + $0x10] sm:$0xff] %v527_v46  ;;  %s1097_s9 = scalar_lea.vmem %s1744_s11, 512  ;;  %s1224_s6 = smov [#allocation7]  }
  0xae   : > { %v581_v13 = vsub.f32 %v443_v32, %v1628_v28  ;;  %v582_v24 = vsub.f32 %v444_v40, %v578_v44  ;;  %863 = vst [vmem:[%s300_s25 + $0x18] sm:$0xff] %v561_v47  ;;  %p1098_p7 = scmp.ne.s32.totalorder %s1744_s11, %s1097_s9  ;;  %s1101_s8 = sshll.u32 %s1224_s6, 4  ;;  %s1102_s8 = int_to_ptr.vmem [resolvable:$false] %s1101_s8 }
  0xaf   : > { %v584_v25 = vadd.f32 %v580_v60, %v579_v0  ;;  %s1103_s10 = scalar_lea.vmem %s1102_s8, 1024  ;;  %p1104_p9 = scmp.lt.s32.totalorder %s1744_s11, %s1102_s8 }
  0xb0   : > { %p1099_p10 = pnand %p1098_p7, %p1842_p0  ;;  %p1105_p1 = scmp.lt.s32.totalorder %s1103_s10, %s1097_s9 }
  0xb1   : > { %v585_v26 = vadd.f32 %v584_v25, %v581_v13 }
  0xb2   : > { %p1100_p12 = pneg %p1099_p10  ;;  %p1106_p6 = por %p1105_p1, %p1104_p9 }
  0xb4   : > { %p1107_p2 = pnand %p1106_p6, %p1100_p12 }
  0xb6   : > { %1110 = shalt.err (!%p1107_p2)
}
  0xb7   : > { %s1111_s22 = scalar_lea.hbm %s1742_s13, 512  ;;  %s1115_s27 = scalar_lea.hbm %s1825_s2, 1024 }
  0xb8   : > { %p1112_p5 = scmp.ne.s32.totalorder %s1742_s13, %s1111_s22  ;;  %p1116_p8 = scmp.lt.u32.totalorder %s1742_s13, %s1825_s2 }
  0xb9   : > { %p1117_p11 = scmp.lt.u32.totalorder %s1115_s27, %s1111_s22  ;;  %p1119_p7 = scmp.lt.u32.totalorder %s1111_s22, %s1742_s13 }
  0xba   : > { %p1113_p13 = pnand %p1112_p5, %p1842_p0 }
  0xbb   : > { %p1118_p4 = por %p1117_p11, %p1116_p8 }
  0xbc   : > { %p1114_p3 = pneg %p1113_p13 }
  0xbd   : > { %p1120_p10 = por %p1119_p7, %p1118_p4 }
  0xbf   : > { %p1121_p12 = pnand %p1120_p10, %p1114_p3 }
  0xc1   : > { %1124 = shalt.err (!%p1121_p12)
}
  0xc2   : > { %883 = dma.vmem_to_hbm [thread:$0]  (%p1842_p0), %s1744_s11, 512, %s1742_s13, %s590_s21, %s1222_s14, %s1222_s14, %s1223_s24   ;;  %v586_v27 = vadd.f32 %v585_v26, %v582_v24 }
  0xc3   : > { %s314_s9 = scalar_lea.vmem [#allocation10], %s838_s0  ;;  %s873_s10 = sshll.u32 %s1207_s18, 7 }
  0xc4   : > { %s650_s8 = sshll.u32 %s314_s9, 4  ;;  %s648_s25 = scalar_lea.hbm %s1827_s4, %s873_s10  ;;  %588 = vst [vmem:[%s314_s9] sm:$0xff] %v586_v27  ;;  %s1776_s8 = int_to_ptr.vmem [resolvable:$true] %s650_s8 }
  0xc5   : > { %s1125_s27 = scalar_lea.vmem %s1776_s8, 128  ;;  %s1225_s12 = smov [#allocation10]  }
  0xc6   : > { %p1126_p9 = scmp.ne.s32.totalorder %s1776_s8, %s1125_s27  ;;  %s1129_s0 = sshll.u32 %s1225_s12, 4  ;;  %s1130_s0 = int_to_ptr.vmem [resolvable:$false] %s1129_s0 }
  0xc7   : > { %s1131_s18 = scalar_lea.vmem %s1130_s0, 256  ;;  %p1132_p2 = scmp.lt.s32.totalorder %s1776_s8, %s1130_s0 }
  0xc8   : > { %p1127_p1 = pnand %p1126_p9, %p1842_p0  ;;  %p1133_p5 = scmp.lt.s32.totalorder %s1131_s18, %s1125_s27 }
  0xca   : > { %p1128_p6 = pneg %p1127_p1  ;;  %p1134_p13 = por %p1133_p5, %p1132_p2 }
  0xcc   : > { %p1135_p3 = pnand %p1134_p13, %p1128_p6 }
  0xce   : > { %1138 = shalt.err (!%p1135_p3)
}
  0xcf   : > { %s1139_s14 = scalar_lea.hbm %s648_s25, 128  ;;  %s1143_s13 = scalar_lea.hbm %s1827_s4, 256 }
  0xd0   : > { %p1140_p8 = scmp.ne.s32.totalorder %s648_s25, %s1139_s14  ;;  %p1144_p7 = scmp.lt.u32.totalorder %s648_s25, %s1827_s4 }
  0xd1   : > { %p1145_p10 = scmp.lt.u32.totalorder %s1143_s13, %s1139_s14  ;;  %p1147_p9 = scmp.lt.u32.totalorder %s1139_s14, %s648_s25 }
  0xd2   : > { %p1141_p11 = pnand %p1140_p8, %p1842_p0 }
  0xd3   : > { %p1146_p12 = por %p1145_p10, %p1144_p7 }
  0xd4   : > { %p1142_p4 = pneg %p1141_p11 }
  0xd5   : > { %p1148_p1 = por %p1147_p9, %p1146_p12 }
  0xd7   : > { %p1149_p6 = pnand %p1148_p1, %p1142_p4 }
  0xd9   : > { %1152 = shalt.err (!%p1149_p6)
}
  0xda   : > { %885 = dma.vmem_to_hbm [thread:$0]  (%p1842_p0), %s1776_s8, 128, %s648_s25, %s1696_s26  }
  0xdb PF: > { %s662_s6 = sand.u32 1, %s1195_s15   ;;  %p1843_p2 = scmp.ne.s32.totalorder %s1835_s30, 0 }
  0xdc   : > { %p1844_p5 = scmp.ge.s32.totalorder %s1215_s20, 2  ;;  %s663_s9 = scalar_lea.sflag [#allocation4], %s662_s6 }
  0xde   : > { %p897_p13 = pnand %p1844_p5, %p1843_p2 }
  0xe0   : > { %1186 = dma.done.wait (!%p897_p13), %s663_s9, 512  }
  0xe1   : > { %1188 = vsyncadd (!%p897_p13), %s663_s9, 4294966784  ;;  %s1845_s10 = sadd.s32 4294967294, %s1215_s20  }
  0xe2   : > { %s671_s22 = sand.u32 1, %s1845_s10  }
  0xe3   : > { %s672_s5 = scalar_lea.sflag [#allocation9], %s671_s22 }
  0xe4   : > { %1190 = dma.done.wait (!%p897_p13), %s672_s5, 640  }
  0xe5   : > { %1192 = vsyncadd (!%p897_p13), %s672_s5, 4294966656  ;;  %s27_s20 = sadd.s32 1, %s1215_s20   ;;  %s1846_s15 = smov %s1199_s16 }
  0xe6   : > { %p24_p0 = scmp.ge.s32.totalorder %s27_s20, 4   ;;  %s1847_s16 = smov %s1203_s17 }
  0xe7   : > { %s1848_s17 = smov %s1313_s29  ;;  %s1849_s18 = smov %s1211_s19 }
  0xe8   : > { %s1850_s19 = smov %s1852_s23  ;;  %26 = sbr.rel (!%p24_p0) target bundleno = 12 (0xc), region = 131 }
  0xef   :  { %686 = vsyncpa [#allocation3], 1 }
  0xf0   :  { %688 = vsyncpa [#allocation3 + $0x1], 1 }
  0xf1   :  { %689 = vsyncpa [#allocation6], 1 }
  0xf2   :  { %691 = vsyncpa [#allocation6 + $0x1], 1 }
  0xf3   :  { %692 = vsyncpa [#allocation4], 1 }
  0xf4   :  { %694 = vsyncpa [#allocation4 + $0x1], 1 }
  0xf5   :  { %695 = vsyncpa [#allocation9], 1 }
  0xf6   :  { %697 = vsyncpa [#allocation9 + $0x1], 1 }

</bundles_post_ra>
